<compile_context>
chip_gen: v7x
topology: tpu7x:2x2x1
jax: 0.10.0
libtpu: 0.0.40
codegen_flags: <defaults>
</compile_context>

<pallas_src>
import math

import jax
import jax.numpy as jnp
from jax.experimental import pallas as pl
from jax.experimental.pallas import tpu as pltpu


_SINGLE_TILE_MAX_BYTES = 256 << 10   # below this, pipelining is not worth the overhead
_TARGET_TILE_BYTES = 3 << 20         # ~2-4 MiB streamed tile ~= 85%+ of HBM roofline
_WEIGHT_VMEM_BUDGET = 2 << 20        # replicated-weight budget (x2 once pipeline-buffered)


def _cdiv(a, b):
    return -(-a // b)


def _round_up(a, b):
    return _cdiv(a, b) * b


def _sae_kernel(x_ref, w1_ref, b1_ref, w23_ref, b23_ref, w4_ref, b4_ref, out_ref):
    mm_dtype = w1_ref.dtype

    x = x_ref[...]
    if x.dtype != mm_dtype:
        x = x.astype(mm_dtype)   # only when the I/O dtype differs from the matmul dtype

    # encoder: Linear -> ReLU              (Dropout = identity in eval mode)
    h = jnp.dot(x, w1_ref[...], preferred_element_type=jnp.float32) + b1_ref[...]
    h = jnp.maximum(h, 0.0)

    # fused (encoder Linear2 . decoder Linear1) -> ReLU   (Dropout = identity)
    d = jnp.dot(h.astype(mm_dtype), w23_ref[...],
                preferred_element_type=jnp.float32) + b23_ref[...]
    d = jnp.maximum(d, 0.0)

    # decoder: final Linear
    y = jnp.dot(d.astype(mm_dtype), w4_ref[...],
                preferred_element_type=jnp.float32) + b4_ref[...]
    out_ref[...] = y.astype(out_ref.dtype)


def _choose_pack(D, H, itemsize, budget_bytes):
    """Samples packed per 128-lane row; weights get replicated block-diagonally."""
    def replicated_weight_bytes(p):
        Dp, Hp = D * p, H * p
        return (2 * Dp * Hp + Hp * Hp) * itemsize + (2 * Hp + Dp) * 4  # + f32 biases

    # Preference order:
    #   1) Dp % 256 == 0 and Hp % 128 == 0 (fills the 256-wide v6e/v7x MXU, lane-dense h/d)
    #   2) Dp % 128 == 0                   (lane-dense x/out at least)
    #   3) no packing
    candidates = [
        math.lcm(256 // math.gcd(D, 256), 128 // math.gcd(H, 128)),
        128 // math.gcd(D, 128),
    ]
    for p in candidates:
        if p >= 1 and replicated_weight_bytes(p) <= budget_bytes:
            return p
    return 1


def prepare_params(params, *, matmul_dtype=jnp.float32,
                   weight_vmem_budget=_WEIGHT_VMEM_BUDGET):
    """One-time weight packing (hoisted out of the per-call forward).

    `params` holds pre-transposed weights: w* of shape (in_features, out_features) and
    b* of shape (1, out_features), so y = x @ W + b matches PyTorch's x @ weight.T + bias.

    matmul_dtype: dtype fed to the MXU.  bfloat16 is the MXU-native mode on all TPU
    generations (recommended on v5e and for bf16 I/O); float32 keeps reference accuracy.
    Biases stay float32 so the bias add + ReLU run on the f32 accumulator.
    """
    f32 = jnp.float32
    w1, b1 = jnp.asarray(params["w1"], f32), jnp.asarray(params["b1"], f32)
    w2, b2 = jnp.asarray(params["w2"], f32), jnp.asarray(params["b2"], f32)
    w3, b3 = jnp.asarray(params["w3"], f32), jnp.asarray(params["b3"], f32)
    w4, b4 = jnp.asarray(params["w4"], f32), jnp.asarray(params["b4"], f32)

    # Fuse the two back-to-back linears (no nonlinearity between them; dropout=identity):
    #   z = h@w2+b2 ; d = z@w3+b3   ==>   d = h@(w2@w3) + (b2@w3 + b3)
    w23 = w2 @ w3
    b23 = b2 @ w3 + b3

    D, H = w1.shape
    itemsize = jnp.dtype(matmul_dtype).itemsize
    pack = _choose_pack(D, H, itemsize, weight_vmem_budget)

    if pack > 1:
        eye = jnp.eye(pack, dtype=f32)
        w1 = jnp.kron(eye, w1)        # (D*pack, H*pack) block-diagonal
        w23 = jnp.kron(eye, w23)      # (H*pack, H*pack)
        w4 = jnp.kron(eye, w4)        # (H*pack, D*pack)
        b1 = jnp.tile(b1, (1, pack))
        b23 = jnp.tile(b23, (1, pack))
        b4 = jnp.tile(b4, (1, pack))

    return dict(
        pack=pack, D=D, H=H, Dp=D * pack, Hp=H * pack,
        w1=w1.astype(matmul_dtype), b1=b1,
        w23=w23.astype(matmul_dtype), b23=b23,
        w4=w4.astype(matmul_dtype), b4=b4,
    )


def _pick_tiles(Bp, Dp, x_itemsize, row_align, target_tile_bytes):
    x_bytes = Bp * Dp * x_itemsize
    if x_bytes <= _SINGLE_TILE_MAX_BYTES or Bp <= row_align:
        return Bp, 1                       # tiny input: one full-extent block
    # >= 4 tiles and an even count so the "parallel" axis splits over both v7x cores.
    n_target = max(4, _cdiv(x_bytes, target_tile_bytes))
    if n_target % 2:
        n_target += 1
    tbp = _round_up(_cdiv(Bp, n_target), row_align)
    n_tiles = _cdiv(Bp, tbp)
    while n_tiles > 2 and n_tiles % 2 and tbp > row_align:
        tbp -= row_align                   # nudge until the grid count is even
        n_tiles = _cdiv(Bp, tbp)
    return tbp, n_tiles


def sparse_autoencoder_forward(x, prep, *, target_tile_bytes=_TARGET_TILE_BYTES):
    """x: (B, input_dim), f32 or bf16.  prep: output of prepare_params (built once)."""
    B, D = x.shape
    assert D == prep["D"], f"input_dim mismatch: {D} vs {prep['D']}"
    pack, Dp, Hp = prep["pack"], prep["Dp"], prep["Hp"]
    out_dtype = x.dtype
    x_itemsize = jnp.dtype(x.dtype).itemsize
    out_itemsize = jnp.dtype(out_dtype).itemsize

    # Ragged tail: only the < pack leftover rows get padded; skipped entirely when
    # B % pack == 0, keeping the common path copy-free (no full-array pad, no out slice).
    rem = B % pack
    if rem:
        x = jnp.pad(x, ((0, pack - rem), (0, 0)))
    Bp = x.shape[0] // pack
    x_packed = x.reshape(Bp, Dp)           # row-major => free reshape

    # bf16 tiles pack two sublanes per vreg row -> 16-row granularity for bf16 I/O.
    row_align = max(8, 32 // x_itemsize)
    tbp, n_tiles = _pick_tiles(Bp, Dp, x_itemsize, row_align, target_tile_bytes)
    # Note: if Bp % tbp != 0 the last grid block reads unspecified rows (safe) and its
    # out-of-bounds stores are masked by Pallas; rows are independent, so valid rows
    # are unaffected.

    weights = (prep["w1"], prep["b1"], prep["w23"], prep["b23"], prep["w4"], prep["b4"])
    w_bytes = sum(int(a.size) * a.dtype.itemsize for a in weights)

    def resident(a):
        # Constant index_map => weights stay VMEM-resident (DMA'd once, then reused).
        return pl.BlockSpec(a.shape, lambda i: (0,) * a.ndim)

    # VMEM budget: double-buffered x/out tiles + buffered resident weights + f32
    # intermediates.  Explicit limit lifts v5e's 16 MiB scoped default and stays well
    # under v7x's 64 MiB physical VMEM by construction of the tile size.
    x_tile_bytes = tbp * Dp * x_itemsize
    out_tile_bytes = tbp * Dp * out_itemsize
    temp_bytes = tbp * (2 * Hp + Dp) * 4
    vmem_est = 2 * (x_tile_bytes + out_tile_bytes) + 2 * w_bytes + temp_bytes + (2 << 20)
    vmem_limit = int(min(max(vmem_est, 16 << 20), 48 << 20))

    cost = pl.CostEstimate(
        flops=2 * Bp * (Dp * Hp + Hp * Hp + Hp * Dp),
        transcendentals=0,
        bytes_accessed=int(Bp * Dp * (x_itemsize + out_itemsize) + w_bytes),
    )

    out_packed = pl.pallas_call(
        _sae_kernel,
        out_shape=jax.ShapeDtypeStruct((Bp, Dp), out_dtype),
        grid=(n_tiles,),
        in_specs=[pl.BlockSpec((tbp, Dp), lambda i: (i, 0))]
                + [resident(a) for a in weights],
        out_specs=pl.BlockSpec((tbp, Dp), lambda i: (i, 0)),
        compiler_params=pltpu.CompilerParams(
            dimension_semantics=("parallel",),     # both TensorCores on v7x
            vmem_limit_bytes=vmem_limit,
        ),
        cost_estimate=cost,
    )(x_packed, *weights)

    out = out_packed.reshape(Bp * pack, D)
    return out if rem == 0 else out[:B]


def init_params(key, input_dim, latent_dim=8, hidden=16, dtype=jnp.float32):
    """Deterministic synthetic init (uniform, roughly PyTorch Linear scale)."""
    ks = jax.random.split(key, 8)

    def linear(kw, kb, fan_in, fan_out):
        bound = 1.0 / jnp.sqrt(jnp.asarray(fan_in, dtype))
        w = jax.random.uniform(kw, (fan_in, fan_out), dtype, -bound, bound)
        b = jax.random.uniform(kb, (1, fan_out), dtype, -bound, bound)
        return w, b

    w1, b1 = linear(ks[0], ks[1], input_dim, hidden)
    w2, b2 = linear(ks[2], ks[3], hidden, latent_dim)
    w3, b3 = linear(ks[4], ks[5], latent_dim, hidden)
    w4, b4 = linear(ks[6], ks[7], hidden, input_dim)
    return dict(w1=w1, b1=b1, w2=w2, b2=b2, w3=w3, b3=b3, w4=w4, b4=b4)


def reference_forward(x, p):
    """Unfused reference matching the original PyTorch forward (eval mode)."""
    xf = x.astype(jnp.float32)
    h = jnp.maximum(xf @ p["w1"] + p["b1"], 0.0)
    z = h @ p["w2"] + p["b2"]
    d = jnp.maximum(z @ p["w3"] + p["b3"], 0.0)
    return d @ p["w4"] + p["b4"]


if __name__ == "__main__":
    key = jax.random.PRNGKey(0)
    k_x, k_p, k_x2 = jax.random.split(key, 3)

    input_dim, latent_dim = 32, 8
    params = init_params(k_p, input_dim, latent_dim)
    prep = prepare_params(params)                       # one-time weight packing (f32 MXU)

    # Small shape consistent with the module: batch=8 rows of 32 features.
    # B % pack == 0, so this path is completely copy-free around the kernel.
    # Tolerances cover TPU default matmul precision (bf16 passes) in kernel vs reference.
    x_small = jax.random.normal(k_x, (8, input_dim), jnp.float32)
    out_small = jax.block_until_ready(sparse_autoencoder_forward(x_small, prep))
    ref_small = reference_forward(x_small, params)
    assert out_small.shape == (8, input_dim)
    assert jnp.allclose(out_small, ref_small, atol=2e-2, rtol=2e-2)

    # Multi-tile pipelined path (>=4 even-count tiles) + ragged tail (B % pack != 0,
    # only the <pack leftover rows are padded).
    x_big = jax.random.normal(k_x2, (20003, input_dim), jnp.float32)
    out_big = jax.block_until_ready(sparse_autoencoder_forward(x_big, prep))
    ref_big = reference_forward(x_big, params)
    assert out_big.shape == x_big.shape
    assert jnp.allclose(out_big, ref_big, atol=2e-2, rtol=2e-2)

    # bf16 I/O with bf16 MXU operands (native mode on all generations; critical on v5e):
    # no in-kernel f32 up-cast of the streamed tile, f32 accumulator for bias/ReLU.
    prep_bf16 = prepare_params(params, matmul_dtype=jnp.bfloat16)
    x_bf16 = x_big.astype(jnp.bfloat16)
    out_bf16 = jax.block_until_ready(sparse_autoencoder_forward(x_bf16, prep_bf16))
    assert out_bf16.dtype == jnp.bfloat16
    assert jnp.allclose(out_bf16.astype(jnp.float32), ref_big, atol=5e-2, rtol=5e-2)

    print("KERNEL_OK")
</pallas_src>

<mosaic_0001>
module attributes {stable_mosaic.version = 11 : i64} {
  func.func @_sae_kernel(%arg0: i32, %arg1: memref<1x256xf32, #tpu.memory_space<vmem>>, %arg2: memref<256x128xf32, #tpu.memory_space<vmem>>, %arg3: memref<1x128xf32, #tpu.memory_space<vmem>>, %arg4: memref<128x128xf32, #tpu.memory_space<vmem>>, %arg5: memref<1x128xf32, #tpu.memory_space<vmem>>, %arg6: memref<128x256xf32, #tpu.memory_space<vmem>>, %arg7: memref<1x256xf32, #tpu.memory_space<vmem>>, %arg8: memref<1x256xf32, #tpu.memory_space<vmem>>) attributes {dimension_semantics = [#tpu.dimension_semantics<parallel>], iteration_bounds = array<i64: 1>, scalar_prefetch = 0 : i64, scratch_operands = 0 : i64, tpu.core_type = #tpu.core_type<tc>, window_params = [{transform_indices = @transform_0, window_bounds = array<i64: 1, 256>}, {pipeline_mode = #tpu.pipeline_mode<synchronous>, transform_indices = @transform_1, window_bounds = array<i64: 256, 128>}, {pipeline_mode = #tpu.pipeline_mode<synchronous>, transform_indices = @transform_2, window_bounds = array<i64: 1, 128>}, {pipeline_mode = #tpu.pipeline_mode<synchronous>, transform_indices = @transform_3, window_bounds = array<i64: 128, 128>}, {pipeline_mode = #tpu.pipeline_mode<synchronous>, transform_indices = @transform_4, window_bounds = array<i64: 1, 128>}, {pipeline_mode = #tpu.pipeline_mode<synchronous>, transform_indices = @transform_5, window_bounds = array<i64: 128, 256>}, {pipeline_mode = #tpu.pipeline_mode<synchronous>, transform_indices = @transform_6, window_bounds = array<i64: 1, 256>}, {transform_indices = @transform_7, window_bounds = array<i64: 1, 256>}]} {
    %c0 = arith.constant 0 : index
    %c0_0 = arith.constant 0 : index
    %0 = vector.load %arg1[%c0, %c0_0] : memref<1x256xf32, #tpu.memory_space<vmem>>, vector<1x256xf32>
    %c0_1 = arith.constant 0 : index
    %c0_2 = arith.constant 0 : index
    %1 = vector.load %arg2[%c0_1, %c0_2] : memref<256x128xf32, #tpu.memory_space<vmem>>, vector<256x128xf32>
    %cst = arith.constant dense<0.000000e+00> : vector<1x128xf32>
    %2 = tpu.matmul %0, %1, %cst {dimension_numbers = #tpu.dot_dimension_numbers<[1], [0], [0], [1], [0, 0, 1, 1], [], []>} : vector<1x256xf32>, vector<256x128xf32>, vector<1x128xf32> -> vector<1x128xf32>
    %c0_3 = arith.constant 0 : index
    %c0_4 = arith.constant 0 : index
    %3 = vector.load %arg3[%c0_3, %c0_4] : memref<1x128xf32, #tpu.memory_space<vmem>>, vector<1x128xf32>
    %4 = arith.addf %2, %3 : vector<1x128xf32>
    %cst_5 = arith.constant 0.000000e+00 : f32
    %5 = vector.broadcast %cst_5 : f32 to vector<1x128xf32>
    %6 = arith.maximumf %4, %5 : vector<1x128xf32>
    %c0_6 = arith.constant 0 : index
    %c0_7 = arith.constant 0 : index
    %7 = vector.load %arg4[%c0_6, %c0_7] : memref<128x128xf32, #tpu.memory_space<vmem>>, vector<128x128xf32>
    %cst_8 = arith.constant dense<0.000000e+00> : vector<1x128xf32>
    %8 = tpu.matmul %6, %7, %cst_8 {dimension_numbers = #tpu.dot_dimension_numbers<[1], [0], [0], [1], [0, 0, 1, 1], [], []>} : vector<1x128xf32>, vector<128x128xf32>, vector<1x128xf32> -> vector<1x128xf32>
    %c0_9 = arith.constant 0 : index
    %c0_10 = arith.constant 0 : index
    %9 = vector.load %arg5[%c0_9, %c0_10] : memref<1x128xf32, #tpu.memory_space<vmem>>, vector<1x128xf32>
    %10 = arith.addf %8, %9 : vector<1x128xf32>
    %cst_11 = arith.constant 0.000000e+00 : f32
    %11 = vector.broadcast %cst_11 : f32 to vector<1x128xf32>
    %12 = arith.maximumf %10, %11 : vector<1x128xf32>
    %c0_12 = arith.constant 0 : index
    %c0_13 = arith.constant 0 : index
    %13 = vector.load %arg6[%c0_12, %c0_13] : memref<128x256xf32, #tpu.memory_space<vmem>>, vector<128x256xf32>
    %cst_14 = arith.constant dense<0.000000e+00> : vector<1x256xf32>
    %14 = tpu.matmul %12, %13, %cst_14 {dimension_numbers = #tpu.dot_dimension_numbers<[1], [0], [0], [1], [0, 0, 1, 1], [], []>} : vector<1x128xf32>, vector<128x256xf32>, vector<1x256xf32> -> vector<1x256xf32>
    %c0_15 = arith.constant 0 : index
    %c0_16 = arith.constant 0 : index
    %15 = vector.load %arg7[%c0_15, %c0_16] : memref<1x256xf32, #tpu.memory_space<vmem>>, vector<1x256xf32>
    %16 = arith.addf %14, %15 : vector<1x256xf32>
    %c0_17 = arith.constant 0 : index
    %c0_18 = arith.constant 0 : index
    %17 = vector.load %arg8[%c0_17, %c0_18] : memref<1x256xf32, #tpu.memory_space<vmem>>, vector<1x256xf32>
    tpu.vector_store %arg8[%c0_17, %c0_18], %16 {strides = array<i32>} : memref<1x256xf32, #tpu.memory_space<vmem>>, vector<1x256xf32>,
    return
  }
  func.func @transform_0(%arg0: i32) -> (i32, i32) {
    %c0_i32 = arith.constant 0 : i32
    %c0_i32_0 = arith.constant 0 : i32
    return %arg0, %c0_i32 : i32, i32
  }
  func.func @transform_1(%arg0: i32) -> (i32, i32) {
    %c0_i32 = arith.constant 0 : i32
    %c0_i32_0 = arith.constant 0 : i32
    %c0_i32_1 = arith.constant 0 : i32
    return %c0_i32, %c0_i32_0 : i32, i32
  }
  func.func @transform_2(%arg0: i32) -> (i32, i32) {
    %c0_i32 = arith.constant 0 : i32
    %c0_i32_0 = arith.constant 0 : i32
    %c0_i32_1 = arith.constant 0 : i32
    return %c0_i32, %c0_i32_0 : i32, i32
  }
  func.func @transform_3(%arg0: i32) -> (i32, i32) {
    %c0_i32 = arith.constant 0 : i32
    %c0_i32_0 = arith.constant 0 : i32
    %c0_i32_1 = arith.constant 0 : i32
    return %c0_i32, %c0_i32_0 : i32, i32
  }
  func.func @transform_4(%arg0: i32) -> (i32, i32) {
    %c0_i32 = arith.constant 0 : i32
    %c0_i32_0 = arith.constant 0 : i32
    %c0_i32_1 = arith.constant 0 : i32
    return %c0_i32, %c0_i32_0 : i32, i32
  }
  func.func @transform_5(%arg0: i32) -> (i32, i32) {
    %c0_i32 = arith.constant 0 : i32
    %c0_i32_0 = arith.constant 0 : i32
    %c0_i32_1 = arith.constant 0 : i32
    return %c0_i32, %c0_i32_0 : i32, i32
  }
  func.func @transform_6(%arg0: i32) -> (i32, i32) {
    %c0_i32 = arith.constant 0 : i32
    %c0_i32_0 = arith.constant 0 : i32
    %c0_i32_1 = arith.constant 0 : i32
    return %c0_i32, %c0_i32_0 : i32, i32
  }
  func.func @transform_7(%arg0: i32) -> (i32, i32) {
    %c0_i32 = arith.constant 0 : i32
    %c0_i32_0 = arith.constant 0 : i32
    return %arg0, %c0_i32 : i32, i32
  }
}

</mosaic_0001>

<bundles_post_ra>
// kernel: tpu_custom_call.1
= control target key start
LH: loop header
LB: loop body
LE: loop exit
PB: predicated region body
PF: predicated region fallthrough
CT: control target
= control target key end

     0   :  { %12 = vsyncpa [#allocation3], 0  ;;  %s900_s0 = inlined_call_operand.hbm [shape: f32[1,256], index: 0, kind: input, shape index: {}]   ;;  %s901_s1 = inlined_call_operand.hbm [shape: f32[256,128], index: 1, kind: input, shape index: {}]   ;;  %s902_s2 = inlined_call_operand.vmem [shape: f32[1,128], index: 2, kind: input, shape index: {}]   ;;  %s903_s3 = inlined_call_operand.hbm [shape: f32[128,128], index: 3, kind: input, shape index: {}]   ;;  %s904_s4 = inlined_call_operand.vmem [shape: f32[1,128], index: 4, kind: input, shape index: {}]   ;;  %s905_s5 = inlined_call_operand.hbm [shape: f32[128,256], index: 5, kind: input, shape index: {}]   ;;  %s906_s6 = inlined_call_operand.vmem [shape: f32[1,256], index: 6, kind: input, shape index: {}]   ;;  %s907_s7 = inlined_call_operand.hbm [shape: f32[1,256], index: 7, kind: output, shape index: {}]  }
   0x1   :  { %13 = vsyncpa [#allocation6], 0 }
   0x2   :  { %14 = vsyncpa [#allocation9], 0 }
   0x3   :  { %15 = vsyncpa [#allocation4], 0  ;;  %s745_s24 = smov [#allocation5]   ;;  %s627_s28 = scalar_lea.hbm %s901_s1, 4096 }
   0x4   :  { %s31_s25 = sshll.u32 %s745_s24, 4  ;;  %p628_p0 = scmp.ne.s32.totalorder %s901_s1, %s627_s28  ;;  %s32_s25 = int_to_ptr.vmem [resolvable:$true] %s31_s25 }
   0x5   :  { %p631_p1 = scmp.lt.u32.totalorder %s627_s28, %s901_s1 }
   0x7   :  { %p633_p2 = pnand %p631_p1, %p628_p0 }
   0x9   :  { %636 = shalt.err (!%p633_p2)
}
   0xa   :  { %s637_s10 = scalar_lea.vmem %s32_s25, 4096  ;;  %p642_p4 = scmp.lt.s32.totalorder %s32_s25, %s32_s25 }
   0xb   :  { %p638_p3 = scmp.ne.s32.totalorder %s32_s25, %s637_s10  ;;  %p643_p5 = scmp.lt.s32.totalorder %s637_s10, %s637_s10 }
   0xd   :  { %p644_p6 = por %p643_p5, %p642_p4 }
   0xf   :  { %p645_p7 = pnand %p644_p6, %p638_p3 }
  0x11   :  { %648 = shalt.err (!%p645_p7)
}
  0x12   :  { %s746_s11 = smov 128   ;;  %s747_s12 = smov 8  }
  0x13   :  { %37 = dma.hbm_to_vmem [thread:$0]  %s901_s1, 4096, %s32_s25, [#allocation6], %s746_s11, %s746_s11, %s747_s12  }
  0x14   :  { %s748_s15 = smov [#allocation2]   ;;  %s749_s17 = smov [#allocation7]  }
  0x15   :  { %s22_s16 = sshll.u32 %s748_s15, 4  ;;  %s45_s18 = sshll.u32 %s749_s17, 4  ;;  %s23_s16 = int_to_ptr.vmem [resolvable:$true] %s22_s16  ;;  %s46_s18 = int_to_ptr.vmem [resolvable:$true] %s45_s18 }
  0x16   :  { %s649_s21 = scalar_lea.hbm %s900_s0, 32 }
  0x17   :  { %p650_p8 = scmp.ne.s32.totalorder %s900_s0, %s649_s21  ;;  %p653_p9 = scmp.lt.u32.totalorder %s649_s21, %s900_s0 }
  0x19   :  { %p655_p10 = pnand %p653_p9, %p650_p8 }
  0x1b   :  { %658 = shalt.err (!%p655_p10)
}
  0x1c   :  { %s659_s1 = scalar_lea.vmem %s23_s16, 32  ;;  %p664_p12 = scmp.lt.s32.totalorder %s23_s16, %s23_s16 }
  0x1d   :  { %p660_p11 = scmp.ne.s32.totalorder %s23_s16, %s659_s1  ;;  %p665_p13 = scmp.lt.s32.totalorder %s659_s1, %s659_s1 }
  0x1f   :  { %p666_p0 = por %p665_p13, %p664_p12 }
  0x21   :  { %p667_p1 = pnand %p666_p0, %p660_p11 }
  0x23   :  { %670 = shalt.err (!%p667_p1)
}
  0x24   :  { %25 = dma.hbm_to_vmem [thread:$0]  %s900_s0, 32, %s23_s16, [#allocation3]  }
  0x25   :  { %s671_s30 = scalar_lea.hbm %s903_s3, 2048 }
  0x26   :  { %p672_p2 = scmp.ne.s32.totalorder %s903_s3, %s671_s30  ;;  %p675_p3 = scmp.lt.u32.totalorder %s671_s30, %s903_s3 }
  0x28   :  { %p677_p4 = pnand %p675_p3, %p672_p2 }
  0x2a   :  { %680 = shalt.err (!%p677_p4)
}
  0x2b   :  { %s681_s14 = scalar_lea.vmem %s46_s18, 2048  ;;  %p686_p6 = scmp.lt.s32.totalorder %s46_s18, %s46_s18 }
  0x2c   :  { %p682_p5 = scmp.ne.s32.totalorder %s46_s18, %s681_s14  ;;  %p687_p7 = scmp.lt.s32.totalorder %s681_s14, %s681_s14 }
  0x2e   :  { %p688_p8 = por %p687_p7, %p686_p6 }
  0x30   :  { %p689_p9 = pnand %p688_p8, %p682_p5 }
  0x32   :  { %692 = shalt.err (!%p689_p9)
}
  0x33   :  { %51 = dma.hbm_to_vmem [thread:$0]  %s903_s3, 2048, %s46_s18, [#allocation6], %s746_s11, %s746_s11, %s747_s12  }
  0x34   :  { %s750_s16 = smov [#allocation8]   ;;  %s693_s21 = scalar_lea.hbm %s905_s5, 4096 }
  0x35   :  { %s59_s17 = sshll.u32 %s750_s16, 4  ;;  %p694_p10 = scmp.ne.s32.totalorder %s905_s5, %s693_s21  ;;  %s60_s17 = int_to_ptr.vmem [resolvable:$true] %s59_s17 }
  0x36   :  { %p697_p11 = scmp.lt.u32.totalorder %s693_s21, %s905_s5 }
  0x38   :  { %p699_p12 = pnand %p697_p11, %p694_p10 }
  0x3a   :  { %702 = shalt.err (!%p699_p12)
}
  0x3b   :  { %s703_s1 = scalar_lea.vmem %s60_s17, 4096  ;;  %p708_p0 = scmp.lt.s32.totalorder %s60_s17, %s60_s17 }
  0x3c   :  { %p704_p13 = scmp.ne.s32.totalorder %s60_s17, %s703_s1  ;;  %p709_p1 = scmp.lt.s32.totalorder %s703_s1, %s703_s1 }
  0x3e   :  { %p710_p2 = por %p709_p1, %p708_p0 }
  0x40   :  { %p711_p3 = pnand %p710_p2, %p704_p13 }
  0x42   :  { %714 = shalt.err (!%p711_p3)
}
  0x43   :  { %s751_s3 = smov 256   ;;  %s752_s11 = smov 16  }
  0x44   :  { %65 = dma.hbm_to_vmem [thread:$0]  %s905_s5, 4096, %s60_s17, [#allocation9], %s751_s3, %s751_s3, %s752_s11  }
  0x45   :  { %737 = dma.done.wait [#allocation3], 32  }
  0x46   :  { %738 = vsyncadd [#allocation3], 4294967264 }
  0x47   :  { %739 = dma.done.wait [#allocation6], 6144  }
  0x48   :  { %740 = vsyncadd [#allocation6], 4294961152 }
  0x49   :  { %741 = dma.done.wait [#allocation9], 4096  }
  0x4a   :  { %742 = vsyncadd [#allocation9], 4294963200  ;;  %v753_v0 = vmov 0.0|0.0   ;;  %v115_v1 = vlaneseq  ;;  %v97_v2 = vld [vmem:[#allocation5 + $0x80] sm:$0xff]  ;;  %v98_v3 = vld [vmem:[#allocation5 + $0x88] sm:$0xff]  ;;  %vm754_vm0 = vmmov 0  }
  0x4b   :  { %558 = vmatprep.subr.bf16.mxu1 %v753_v0  ;;  %v81_v4 = vld [vmem:[#allocation5] sm:$0xff]  ;;  %v526_v5 = vpack.c.bf16 %v98_v3, %v97_v2  ;;  %v82_v6 = vld [vmem:[#allocation5 + $0x8] sm:$0xff]  ;;  %v99_v7 = vld [vmem:[#allocation5 + $0x90] sm:$0xff] }
  0x4c   :  { %v100_v8 = vld [vmem:[#allocation5 + $0x98] sm:$0xff]  ;;  %v528_v9 = vpack.c.bf16 %v82_v6, %v81_v4  ;;  %v83_v11 = vld [vmem:[#allocation5 + $0x10] sm:$0xff]  ;;  %v101_v13 = vld [vmem:[#allocation5 + $0xa0] sm:$0xff]  ;;  %v854_v15 = vshrl.u32 %v115_v1, 7  ;;  %vm419_vm1 = vcmp.lt.s32.totalorder %v115_v1, 256 }
  0x4d   :  { %v530_v10 = vpack.c.bf16 %v100_v8, %v99_v7  ;;  %v84_v12 = vld [vmem:[#allocation5 + $0x18] sm:$0xff]  ;;  %527 = vmatprep.subr.bf16.mxu0 %v526_v5  ;;  %v102_v14 = vld [vmem:[#allocation5 + $0xa8] sm:$0xff]  ;;  %v85_v18 = vld [vmem:[#allocation5 + $0x20] sm:$0xff] }
  0x4e   :  { %529 = vmatpush3.bf16.msra.mxu0 %v528_v9  ;;  %v532_v16 = vpack.c.bf16 %v84_v12, %v83_v11  ;;  %v534_v17 = vpack.c.bf16 %v102_v14, %v101_v13  ;;  %v86_v19 = vld [vmem:[#allocation5 + $0x28] sm:$0xff]  ;;  %v103_v20 = vld [vmem:[#allocation5 + $0xb0] sm:$0xff]  ;;  %v104_v21 = vld [vmem:[#allocation5 + $0xb8] sm:$0xff]  ;;  %v121_v22 = vsub.s32 1, %v854_v15  ;;  %v117_v6 = vsub.s32 0, %v854_v15 }
  0x4f   :  { %531 = vmatprep.subr.bf16.mxu0 %v530_v10  ;;  %v536_v23 = vpack.c.bf16 %v86_v19, %v85_v18  ;;  %v538_v24 = vpack.c.bf16 %v104_v21, %v103_v20  ;;  %v87_v25 = vld [vmem:[#allocation5 + $0x30] sm:$0xff]  ;;  %v88_v26 = vld [vmem:[#allocation5 + $0x38] sm:$0xff]  ;;  %v105_v27 = vld [vmem:[#allocation5 + $0xc0] sm:$0xff]  ;;  %v755_v19 = vmov 0.0  }
  0x50   :  { %v106_v28 = vld [vmem:[#allocation5 + $0xc8] sm:$0xff]  ;;  %v857_v29 = vld [vmem:[#allocation2] sm:$0x3]  ;;  %v196_v31 = vld [vmem:[#allocation7] sm:$0xff]  ;;  %v540_v34 = vpack.c.bf16 %v88_v26, %v87_v25  ;;  %523 = vmatprep.mubr.msk.f32.mxu1 %vm754_vm0, %v755_v19 }
  0x51   :  { %v122_v30 = vrot.slane %v857_v29, %v121_v22  ;;  %v197_v32 = vld [vmem:[#allocation7 + $0x8] sm:$0xff]  ;;  %v198_v33 = vld [vmem:[#allocation7 + $0x10] sm:$0xff]  ;;  %v199_v36 = vld [vmem:[#allocation7 + $0x18] sm:$0xff]  ;;  %v542_v37 = vpack.c.bf16 %v106_v28, %v105_v27  ;;  %v118_v11 = vrot.slane %v857_v29, %v117_v6 }
  0x52   :  { %533 = vmatpush3.bf16.msra.mxu0 %v532_v16  ;;  %v559_v35 = vpack.c.bf16 %v197_v32, %v196_v31  ;;  %v89_v38 = vld [vmem:[#allocation5 + $0x40] sm:$0xff]  ;;  %v90_v39 = vld [vmem:[#allocation5 + $0x48] sm:$0xff]  ;;  %v107_v40 = vld [vmem:[#allocation5 + $0xd0] sm:$0xff]  ;;  %v562_v42 = vpack.c.bf16 %v199_v36, %v198_v33 }
  0x53   :  { %535 = vmatprep.subr.bf16.mxu0 %v534_v17  ;;  %189 = vmatprep.mubr.f32.mxu0 %v122_v30  ;;  %v108_v41 = vld [vmem:[#allocation5 + $0xd8] sm:$0xff]  ;;  %v200_v43 = vld [vmem:[#allocation7 + $0x20] sm:$0xff]  ;;  %v201_v44 = vld [vmem:[#allocation7 + $0x28] sm:$0xff]  ;;  %v544_v45 = vpack.c.bf16 %v90_v39, %v89_v38 }
  0x54   :  { %560 = vmatpush3.bf16.msra.mxu1 %v559_v35  ;;  %v546_v46 = vpack.c.bf16 %v108_v41, %v107_v40  ;;  %v91_v47 = vld [vmem:[#allocation5 + $0x50] sm:$0xff]  ;;  %v92_v48 = vld [vmem:[#allocation5 + $0x58] sm:$0xff]  ;;  %v109_v49 = vld [vmem:[#allocation5 + $0xe0] sm:$0xff]  ;;  %v565_v51 = vpack.c.bf16 %v201_v44, %v200_v43 }
  0x55   :  { %561 = vmatprep.subr.bf16.mxu1 %v753_v0  ;;  %v110_v50 = vld [vmem:[#allocation5 + $0xe8] sm:$0xff]  ;;  %v202_v52 = vld [vmem:[#allocation7 + $0x30] sm:$0xff]  ;;  %v203_v53 = vld [vmem:[#allocation7 + $0x38] sm:$0xff]  ;;  %v548_v54 = vpack.c.bf16 %v92_v48, %v91_v47 }
  0x56   :  { %537 = vmatpush3.bf16.msra.mxu0 %v536_v23  ;;  %v550_v55 = vpack.c.bf16 %v110_v50, %v109_v49  ;;  %v93_v56 = vld [vmem:[#allocation5 + $0x60] sm:$0xff]  ;;  %v94_v57 = vld [vmem:[#allocation5 + $0x68] sm:$0xff]  ;;  %v111_v58 = vld [vmem:[#allocation5 + $0xf0] sm:$0xff]  ;;  %v568_v60 = vpack.c.bf16 %v203_v53, %v202_v52 }
  0x57   :  { %539 = vmatprep.subr.bf16.mxu0 %v538_v24  ;;  %v112_v59 = vld [vmem:[#allocation5 + $0xf8] sm:$0xff]  ;;  %v204_v61 = vld [vmem:[#allocation7 + $0x40] sm:$0xff]  ;;  %v205_v62 = vld [vmem:[#allocation7 + $0x48] sm:$0xff]  ;;  %v552_v63 = vpack.c.bf16 %v94_v57, %v93_v56 }
  0x58   :  { %563 = vmatpush3.bf16.msra.mxu1 %v562_v42  ;;  %v554_v2 = vpack.c.bf16 %v112_v59, %v111_v58  ;;  %v95_v3 = vld [vmem:[#allocation5 + $0x70] sm:$0xff]  ;;  %v96_v4 = vld [vmem:[#allocation5 + $0x78] sm:$0xff]  ;;  %v571_v5 = vpack.c.bf16 %v205_v62, %v204_v61  ;;  %v208_v12 = vld [vmem:[#allocation7 + $0x60] sm:$0xff] }
  0x59   :  { %564 = vmatprep.subr.bf16.mxu1 %v753_v0  ;;  %v206_v7 = vld [vmem:[#allocation7 + $0x50] sm:$0xff]  ;;  %v207_v8 = vld [vmem:[#allocation7 + $0x58] sm:$0xff]  ;;  %v556_v9 = vpack.c.bf16 %v96_v4, %v95_v3  ;;  %v209_v13 = vld [vmem:[#allocation7 + $0x68] sm:$0xff] }
  0x5a   :  { %541 = vmatpush3.bf16.msra.mxu0 %v540_v34  ;;  %v574_v10 = vpack.c.bf16 %v207_v8, %v206_v7  ;;  %v577_v14 = vpack.c.bf16 %v209_v13, %v208_v12  ;;  %v210_v16 = vld [vmem:[#allocation7 + $0x70] sm:$0xff]  ;;  %v211_v17 = vld [vmem:[#allocation7 + $0x78] sm:$0xff]  ;;  %v285_v20 = vld [vmem:[#allocation8 + $0x8] sm:$0xff] }
  0x5b   :  { %543 = vmatprep.subr.bf16.mxu0 %v542_v37  ;;  %v580_v18 = vpack.c.bf16 %v211_v17, %v210_v16  ;;  %v287_v21 = vld [vmem:[#allocation8 + $0x18] sm:$0xff]  ;;  %v284_v23 = vld [vmem:[#allocation8] sm:$0xff]  ;;  %v286_v25 = vld [vmem:[#allocation8 + $0x10] sm:$0xff] }
  0x5c   :  { %566 = vmatpush3.bf16.msra.mxu1 %v565_v51  ;;  %v582_v24 = vpack.c.bf16 %v287_v21, %v285_v20  ;;  %v289_v26 = vld [vmem:[#allocation8 + $0x28] sm:$0xff]  ;;  %v291_v27 = vld [vmem:[#allocation8 + $0x38] sm:$0xff]  ;;  %v584_v28 = vpack.c.bf16 %v286_v25, %v284_v23  ;;  %v288_v30 = vld [vmem:[#allocation8 + $0x20] sm:$0xff]  ;;  %v756_v20 = vmov 1966171168  }
  0x5d   :  { %567 = vmatprep.subr.bf16.mxu1 %v753_v0  ;;  %v586_v29 = vpack.c.bf16 %v291_v27, %v289_v26  ;;  %v290_v31 = vld [vmem:[#allocation8 + $0x30] sm:$0xff]  ;;  %v295_v32 = vld [vmem:[#allocation8 + $0x58] sm:$0xff]  ;;  %v292_v35 = vld [vmem:[#allocation8 + $0x40] sm:$0xff]  ;;  %v403_v21 = vunpack.c.l.s4 %v756_v20 }
  0x5e   :  { %545 = vmatpush3.bf16.msra.mxu0 %v544_v45  ;;  %v588_v33 = vpack.c.bf16 %v290_v31, %v288_v30  ;;  %v294_v36 = vld [vmem:[#allocation8 + $0x50] sm:$0xff]  ;;  %v297_v37 = vld [vmem:[#allocation8 + $0x68] sm:$0xff]  ;;  %v299_v38 = vld [vmem:[#allocation8 + $0x78] sm:$0xff] }
  0x5f   :  { %547 = vmatprep.subr.bf16.mxu0 %v546_v46  ;;  %v592_v39 = vpack.c.bf16 %v294_v36, %v292_v35  ;;  %v594_v40 = vpack.c.bf16 %v299_v38, %v297_v37  ;;  %v296_v41 = vld [vmem:[#allocation8 + $0x60] sm:$0xff]  ;;  %v298_v42 = vld [vmem:[#allocation8 + $0x70] sm:$0xff]  ;;  %v301_v43 = vld [vmem:[#allocation8 + $0x88] sm:$0xff]  ;;  %v404_v25 = vunpack.c.0.s8 %v403_v21 }
  0x60   :  { %569 = vmatpush3.bf16.msra.mxu1 %v568_v60  ;;  %v303_v44 = vld [vmem:[#allocation8 + $0x98] sm:$0xff]  ;;  %v596_v45 = vpack.c.bf16 %v298_v42, %v296_v41  ;;  %v300_v47 = vld [vmem:[#allocation8 + $0x80] sm:$0xff]  ;;  %v302_v48 = vld [vmem:[#allocation8 + $0x90] sm:$0xff] }
  0x61   :  { %570 = vmatprep.subr.bf16.mxu1 %v753_v0  ;;  %v598_v46 = vpack.c.bf16 %v303_v44, %v301_v43  ;;  %v305_v49 = vld [vmem:[#allocation8 + $0xa8] sm:$0xff]  ;;  %v307_v50 = vld [vmem:[#allocation8 + $0xb8] sm:$0xff]  ;;  %v600_v51 = vpack.c.bf16 %v302_v48, %v300_v47  ;;  %v304_v53 = vld [vmem:[#allocation8 + $0xa0] sm:$0xff]  ;;  %v407_v30 = vsub.s32 %v404_v25, %v854_v15 }
  0x62   :  { %549 = vmatpush3.bf16.msra.mxu0 %v548_v54  ;;  %v602_v52 = vpack.c.bf16 %v307_v50, %v305_v49  ;;  %v306_v54 = vld [vmem:[#allocation8 + $0xb0] sm:$0xff]  ;;  %v311_v56 = vld [vmem:[#allocation8 + $0xd8] sm:$0xff]  ;;  %v308_v59 = vld [vmem:[#allocation8 + $0xc0] sm:$0xff] }
  0x63   :  { %551 = vmatprep.subr.bf16.mxu0 %v550_v55  ;;  %v309_v55 = vld [vmem:[#allocation8 + $0xc8] sm:$0xff]  ;;  %v604_v57 = vpack.c.bf16 %v306_v54, %v304_v53  ;;  %v310_v60 = vld [vmem:[#allocation8 + $0xd0] sm:$0xff]  ;;  %v315_v8 = vld [vmem:[#allocation8 + $0xf8] sm:$0xff] }
  0x64   :  { %572 = vmatpush3.bf16.msra.mxu1 %v571_v5  ;;  %v606_v58 = vpack.c.bf16 %v311_v56, %v309_v55  ;;  %v608_v61 = vpack.c.bf16 %v310_v60, %v308_v59  ;;  %v313_v7 = vld [vmem:[#allocation8 + $0xe8] sm:$0xff]  ;;  %v212_v13 = vld [vmem:[%s904_s4] sm:$0x1]  ;;  %s757_s4 = smov [#allocation10]  }
  0x65   :  { %573 = vmatprep.subr.bf16.mxu1 %v753_v0  ;;  %s428_s30 = sshll.u32 %s757_s4, 4  ;;  %s429_s30 = int_to_ptr.vmem [resolvable:$true] %s428_s30 }
  0x66   :  { %553 = vmatpush3.bf16.msra.mxu0 %v552_v63  ;;  %v113_v63 = vld [vmem:[%s902_s2] sm:$0x1]  ;;  %p720_p5 = scmp.lt.s32.totalorder %s429_s30, %s429_s30 }
  0x67   :  { %555 = vmatprep.subr.bf16.mxu0 %v554_v2 }
  0x68   :  { %575 = vmatpush3.bf16.msra.mxu1 %v574_v10  ;;  %v312_v10 = vld [vmem:[#allocation8 + $0xe0] sm:$0xff] }
  0x69   :  { %576 = vmatprep.subr.bf16.mxu1 %v753_v0 }
  0x6a   :  { %557 = vmatpush3.bf16.msra.mxu0 %v556_v9  ;;  %v610_v9 = vpack.c.bf16 %v315_v8, %v313_v7 }
  0x6b   :  { %583 = vmatprep.subr.bf16.mxu0 %v582_v24 }
  0x6c   :  { %578 = vmatpush3.bf16.msra.mxu1 %v577_v14 }
  0x6d   :  { %190 = vmatmul.mubr.f32.vlgmr.msra.gmra.mrb[0].mxu0 %v118_v11  ;;  %579 = vmatprep.subr.bf16.mxu1 %v753_v0  ;;  %v293_v0 = vld [vmem:[#allocation8 + $0x48] sm:$0xff]  ;;  %v314_v11 = vld [vmem:[#allocation8 + $0xf0] sm:$0xff] }
  0x6e   :  { %392 = vmatprep.mubr.f32.mxu0 %v755_v19  ;;  %585 = vmatpush1.bf16.msra.mxu0 %v584_v28  ;;  %v590_v34 = vpack.c.bf16 %v295_v32, %v293_v0  ;;  %v612_v12 = vpack.c.bf16 %v314_v11, %v312_v10  ;;  %v316_v19 = vld [vmem:[%s906_s6] sm:$0x3]  ;;  %s715_s6 = scalar_lea.vmem %s429_s30, 32 }
  0x6f   :  { %587 = vmatprep.subr.bf16.mxu0 %v586_v29  ;;  %v321_v23 = vrot.slane %v316_v19, %v117_v6  ;;  %v325_v24 = vrot.slane %v316_v19, %v121_v22  ;;  %p716_p4 = scmp.ne.s32.totalorder %s429_s30, %s715_s6  ;;  %p721_p6 = scmp.lt.s32.totalorder %s715_s6, %s715_s6 }
  0x70   :  { %581 = vmatpush3.bf16.msra.mxu1 %v580_v18 }
  0x71   :  { %p722_p7 = por %p721_p6, %p720_p5 }
  0x72   :  { %589 = vmatpush1.bf16.msra.mxu0 %v588_v33 }
  0x73   :  { %591 = vmatprep.subr.bf16.mxu0 %v590_v34  ;;  %p723_p8 = pnand %p722_p7, %p716_p4 }
  0x76   :  { %593 = vmatpush1.bf16.msra.mxu0 %v592_v39 }
  0x77   :  { %595 = vmatprep.subr.bf16.mxu0 %v594_v40 }
  0x7a   :  { %597 = vmatpush1.bf16.msra.mxu0 %v596_v45 }
  0x7b   :  { %599 = vmatprep.subr.bf16.mxu0 %v598_v46 }
  0x7e   :  { %601 = vmatpush1.bf16.msra.mxu0 %v600_v51 }
  0x7f   :  { %603 = vmatprep.subr.bf16.mxu0 %v602_v52 }
  0x82   :  { %605 = vmatpush1.bf16.msra.mxu0 %v604_v57 }
  0x83   :  { %607 = vmatprep.subr.bf16.mxu0 %v606_v58 }
  0x86   :  { %609 = vmatpush1.bf16.msra.mxu0 %v608_v61 }
  0x87   :  { %611 = vmatprep.subr.bf16.mxu0 %v610_v9 }
  0x8a   :  { %613 = vmatpush1.bf16.msra.mxu0 %v612_v12 }
 0x140   :  { %v471_v62 = vpop.f32.mrb[0].mxu0 }
 0x141   :  { %v472_v2 = vpop.f32.mrb[1].mxu0 }
 0x142   :  { %v473_v3 = vadd.f32 %v472_v2, %v471_v62 }
 0x144   :  { %v192_v4 = vadd.f32 %v473_v3, %v113_v63 }
 0x146   :  { %v195_v5 = vmax.f32 %v192_v4, 0.0 }
 0x148   :  { %524 = vmatmul.mubr.f32.vlgmr.msra.gmra.mrb[0].mxu1 %v195_v5 }
 0x21b   :  { %v279_v14 = vpop.f32.mrb[0].mxu1 }
 0x21c   :  { %v280_v16 = vadd.f32 %v279_v14, %v212_v13  ;;  %v525_v17 = vpop.f32.mrb[1].mxu1 }
 0x21e   :  { %v283_v18 = vmax.f32 %v280_v16, 0.0 }
 0x220   :  { %393 = vmatmul.mubr.f32.vlgmr.msra.gmra.mrb[2].mxu0 %v283_v18 }
 0x2f3   :  { %v394_v26 = vpop.f32.mrb[2].mxu0 }
 0x2f4   :  { %v395_v27 = vadd.f32 %v394_v26, %v321_v23  ;;  %v396_v28 = vpop.f32.mrb[3].mxu0 }
 0x2f5   :  { %v397_v29 = vadd.f32 %v396_v28, %v325_v24 }
 0x2f7   :  { %v401_v31 = vcombine.low %v395_v27, %v397_v29 }
 0x2f9   :  { %v408_v0 = vrot.slane %v401_v31, %v407_v30 }
 0x2fb   :  { %v415_v32 = vrot.slane %v408_v0, %v407_v30 }
 0x2fd   :  { %421 = vst.msk [vmem:[#allocation10] sm:$0x3] %vm419_vm1, %v415_v32 }
 0x2fe   :  { %726 = shalt.err (!%p723_p8)
}
 0x2ff   :  { %s727_s10 = scalar_lea.hbm %s907_s7, 32 }
 0x300   :  { %p728_p9 = scmp.ne.s32.totalorder %s907_s7, %s727_s10  ;;  %p731_p10 = scmp.lt.u32.totalorder %s727_s10, %s907_s7 }
 0x302   :  { %p733_p11 = pnand %p731_p10, %p728_p9 }
 0x304   :  { %736 = shalt.err (!%p733_p11)
}
 0x305   :  { %431 = dma.vmem_to_hbm [thread:$0]  %s429_s30, 32, %s907_s7, [#allocation4]  }
 0x306   :  { %743 = dma.done.wait [#allocation4], 32  }
 0x307   :  { %744 = vsyncadd [#allocation4], 4294967264 }
 0x308   :  { %435 = vsyncpa [#allocation3], 1 }
 0x309   :  { %436 = vsyncpa [#allocation6], 1 }
 0x30a   :  { %437 = vsyncpa [#allocation9], 1 }
 0x30b   :  { %438 = vsyncpa [#allocation4], 1 }

</bundles_post_ra>
